<compile_context>
chip_gen: v6e
topology: v6e:2x2x1
jax: 0.10.0
libtpu: 0.0.40
codegen_flags: <defaults>
</compile_context>

<pallas_src>
import jax
import jax.numpy as jnp
from jax.experimental import pallas as pl
from jax.experimental.pallas import tpu as pltpu


def _round_up(x, m):
    return ((x + m - 1) // m) * m


def keep_edge_kernel(w_ref, x_ref, b_ref, o_ref):
    # w_ref: (C, 9*C)   bf16 conv weights with BN scale folded in
    # x_ref: (9*C, TM)  bf16 im2col patch tile (columns = flattened n*H*W + h*W + w)
    # b_ref: (C, 1)     f32 folded BN bias
    # o_ref: (C, TM)    f32 output tile (channel-major == NCHW layout), lane-dense
    acc = jnp.dot(w_ref[...], x_ref[...], preferred_element_type=jnp.float32)
    y = acc + b_ref[...]                      # broadcast (C, 1) -> (C, TM), f32
    o_ref[...] = jnp.maximum(y, 0.0).astype(o_ref.dtype)


def keep_edge_forward(x_nchw, conv_w_oihw, gamma, beta, running_mean,
                      running_var, eps=1e-5, tile_m=4096):
    """KeepEdge forward. x_nchw: (N, C, H, W) float32. Returns (N, C, H, W) float32."""
    N, C, H, W = x_nchw.shape
    Cout, Cin, KH, KW = conv_w_oihw.shape
    assert Cout == C and Cin == C and KH == 3 and KW == 3, "KeepEdge requires Cin==Cout, 3x3"

    M = N * H * W
    tile_m = min(int(tile_m), _round_up(M, 128))
    tile_m = _round_up(tile_m, 128)           # lane-dense, 128-granular (also good on v5e)
    M_pad = _round_up(M, tile_m)
    num_blocks = M_pad // tile_m
    K = 9 * C

    # --- im2col slab, built ONCE in the wrapper (layout glue, not compute) ---------------
    # rows = tap*C + cin (tap = ky*3+kx), cols = n*H*W + h*W + w  -> (9*C, N*H*W)
    x_pad = jnp.pad(x_nchw, ((0, 0), (0, 0), (1, 1), (1, 1)))          # (N, C, H+2, W+2)
    taps = [x_pad[:, :, ky:ky + H, kx:kx + W]
            for ky in range(3) for kx in range(3)]                     # each (N, C, H, W)
    patches = jnp.stack(taps, axis=0)                                  # (9, N, C, H, W)
    patches = jnp.transpose(patches, (0, 2, 1, 3, 4)).reshape(K, M)    # (9*C, M)
    if M_pad != M:
        patches = jnp.pad(patches, ((0, 0), (0, M_pad - M)))
    patches = patches.astype(jnp.bfloat16)

    # --- fold conv weight + BN (eval) into one (C, 9C) matrix and a bias ------------------
    # W2[o, (ky*3+kx)*C + ci] = w[o, ci, ky, kx]
    w2 = jnp.transpose(conv_w_oihw, (0, 2, 3, 1)).reshape(C, K)
    scale = gamma * jax.lax.rsqrt(running_var + eps)                   # (C,)
    bias = beta - running_mean * scale                                 # (C,)
    w2s = (w2 * scale[:, None]).astype(jnp.bfloat16)                   # BN scale folded in
    bias2d = bias.reshape(C, 1).astype(jnp.float32)

    out_cm = pl.pallas_call(
        keep_edge_kernel,
        out_shape=jax.ShapeDtypeStruct((C, M_pad), jnp.float32),
        grid_spec=pltpu.PrefetchScalarGridSpec(
            num_scalar_prefetch=0,
            grid=(num_blocks,),
            in_specs=[
                pl.BlockSpec((C, K), lambda i: (0, 0)),        # weights (resident)
                pl.BlockSpec((K, tile_m), lambda i: (0, i)),   # im2col columns, lane-dense
                pl.BlockSpec((C, 1), lambda i: (0, 0)),        # folded BN bias
            ],
            out_specs=pl.BlockSpec((C, tile_m), lambda i: (0, i)),
        ),
        compiler_params=pltpu.CompilerParams(
            dimension_semantics=("parallel",),
            vmem_limit_bytes=32 * 1024 * 1024),
    )(w2s, patches, bias2d)

    # (C, M) is already (C, N, H, W) order -> cheap transpose back to PyTorch NCHW.
    out = out_cm[:, :M].reshape(C, N, H, W)
    return jnp.transpose(out, (1, 0, 2, 3))


def _reference(x_nchw, conv_w_oihw, gamma, beta, running_mean, running_var,
               eps=1e-5):
    x_nhwc = jnp.transpose(x_nchw, (0, 2, 3, 1))
    w_hwio = jnp.transpose(conv_w_oihw, (2, 3, 1, 0))
    y = jax.lax.conv_general_dilated(
        x_nhwc, w_hwio, window_strides=(1, 1), padding="SAME",
        dimension_numbers=("NHWC", "HWIO", "NHWC"))
    y = (y - running_mean) / jnp.sqrt(running_var + eps) * gamma + beta
    y = jnp.maximum(y, 0.0)
    return jnp.transpose(y, (0, 3, 1, 2))


if __name__ == "__main__":
    key = jax.random.PRNGKey(0)
    k_x, k_w, k_g, k_b, k_m, k_v = jax.random.split(key, 6)

    N, C, H, W = 2, 4, 16, 16  # input_channels == output_channels == 4

    x = jax.random.normal(k_x, (N, C, H, W), dtype=jnp.float32)
    conv_w = jax.random.normal(k_w, (C, C, 3, 3), dtype=jnp.float32) * 0.1
    gamma = 1.0 + 0.1 * jax.random.normal(k_g, (C,), dtype=jnp.float32)
    beta = 0.1 * jax.random.normal(k_b, (C,), dtype=jnp.float32)
    running_mean = 0.1 * jax.random.normal(k_m, (C,), dtype=jnp.float32)
    running_var = 1.0 + 0.1 * jnp.abs(
        jax.random.normal(k_v, (C,), dtype=jnp.float32))

    out = keep_edge_forward(x, conv_w, gamma, beta, running_mean, running_var)
    out = jax.block_until_ready(out)

    ref = _reference(x, conv_w, gamma, beta, running_mean, running_var)
    ref = jax.block_until_ready(ref)

    assert out.shape == (N, C, H, W)
    # bf16 matmul inputs (f32 accumulation) -> loosened tolerance vs the f32 XLA reference.
    max_err = float(jnp.max(jnp.abs(out - ref)))
    assert jnp.allclose(out, ref, atol=5e-2, rtol=5e-2), max_err
    print("KERNEL_OK")
</pallas_src>

<mosaic_0001>
module attributes {stable_mosaic.version = 11 : i64} {
  func.func @keep_edge_kernel(%arg0: i32, %arg1: memref<4x36xbf16, #tpu.memory_space<vmem>>, %arg2: memref<36x512xbf16, #tpu.memory_space<vmem>>, %arg3: memref<4x1xf32, #tpu.memory_space<vmem>>, %arg4: memref<4x512xf32, #tpu.memory_space<vmem>>) attributes {dimension_semantics = [#tpu.dimension_semantics<parallel>], iteration_bounds = array<i64: 1>, scalar_prefetch = 0 : i64, scratch_operands = 0 : i64, tpu.core_type = #tpu.core_type<tc>, window_params = [{pipeline_mode = #tpu.pipeline_mode<synchronous>, transform_indices = @transform_0, window_bounds = array<i64: 4, 36>}, {transform_indices = @transform_1, window_bounds = array<i64: 36, 512>}, {pipeline_mode = #tpu.pipeline_mode<synchronous>, transform_indices = @transform_2, window_bounds = array<i64: 4, 1>}, {transform_indices = @transform_3, window_bounds = array<i64: 4, 512>}]} {
    %c0 = arith.constant 0 : index
    %c0_0 = arith.constant 0 : index
    %0 = vector.load %arg1[%c0, %c0_0] : memref<4x36xbf16, #tpu.memory_space<vmem>>, vector<4x36xbf16>
    %c0_1 = arith.constant 0 : index
    %c0_2 = arith.constant 0 : index
    %1 = vector.load %arg2[%c0_1, %c0_2] : memref<36x512xbf16, #tpu.memory_space<vmem>>, vector<36x512xbf16>
    %cst = arith.constant dense<0.000000e+00> : vector<4x512xf32>
    %2 = tpu.matmul %0, %1, %cst {dimension_numbers = #tpu.dot_dimension_numbers<[1], [0], [0], [1], [0, 0, 1, 1], [], []>} : vector<4x36xbf16>, vector<36x512xbf16>, vector<4x512xf32> -> vector<4x512xf32>
    %c0_3 = arith.constant 0 : index
    %c0_4 = arith.constant 0 : index
    %3 = vector.load %arg3[%c0_3, %c0_4] : memref<4x1xf32, #tpu.memory_space<vmem>>, vector<4x1xf32>
    %4 = vector.broadcast %3 : vector<4x1xf32> to vector<4x512xf32>
    %5 = arith.addf %2, %4 : vector<4x512xf32>
    %cst_5 = arith.constant 0.000000e+00 : f32
    %6 = vector.broadcast %cst_5 : f32 to vector<4x512xf32>
    %7 = arith.maximumf %5, %6 : vector<4x512xf32>
    %c0_6 = arith.constant 0 : index
    %c0_7 = arith.constant 0 : index
    %8 = vector.load %arg4[%c0_6, %c0_7] : memref<4x512xf32, #tpu.memory_space<vmem>>, vector<4x512xf32>
    tpu.vector_store %arg4[%c0_6, %c0_7], %7 {strides = array<i32>} : memref<4x512xf32, #tpu.memory_space<vmem>>, vector<4x512xf32>,
    return
  }
  func.func @transform_0(%arg0: i32) -> (i32, i32) {
    %c0_i32 = arith.constant 0 : i32
    %c0_i32_0 = arith.constant 0 : i32
    %c0_i32_1 = arith.constant 0 : i32
    return %c0_i32, %c0_i32_0 : i32, i32
  }
  func.func @transform_1(%arg0: i32) -> (i32, i32) {
    %c0_i32 = arith.constant 0 : i32
    %c0_i32_0 = arith.constant 0 : i32
    return %c0_i32, %arg0 : i32, i32
  }
  func.func @transform_2(%arg0: i32) -> (i32, i32) {
    %c0_i32 = arith.constant 0 : i32
    %c0_i32_0 = arith.constant 0 : i32
    %c0_i32_1 = arith.constant 0 : i32
    return %c0_i32, %c0_i32_0 : i32, i32
  }
  func.func @transform_3(%arg0: i32) -> (i32, i32) {
    %c0_i32 = arith.constant 0 : i32
    %c0_i32_0 = arith.constant 0 : i32
    return %c0_i32, %arg0 : i32, i32
  }
}

</mosaic_0001>

<bundles_post_ra>
// kernel: tpu_custom_call.1
= control target key start
LH: loop header
LB: loop body
LE: loop exit
PB: predicated region body
PF: predicated region fallthrough
CT: control target
= control target key end

     0   :  { %8 = vsyncpa [#allocation3], 0  ;;  %s344_s0 = inlined_call_operand.vmem [shape: bf16[4,36], index: 0, kind: input, shape index: {}]   ;;  %s345_s1 = inlined_call_operand.hbm [shape: bf16[36,512], index: 1, kind: input, shape index: {}]   ;;  %s346_s2 = inlined_call_operand.vmem [shape: f32[4,1], index: 2, kind: input, shape index: {}]   ;;  %s347_s3 = inlined_call_operand.hbm [shape: f32[4,512], index: 3, kind: output, shape index: {}]  }
   0x1   :  { %9 = vsyncpa [#allocation4], 0  ;;  %s307_s12 = smov [#allocation2]  }
   0x2   :  { %s17_s13 = sshll.u32 %s307_s12, 4  ;;  %s18_s13 = int_to_ptr.vmem [resolvable:$true] %s17_s13 }
   0x3   :  { %s271_s14 = scalar_lea.vmem %s18_s13, 1280  ;;  %p276_p1 = scmp.lt.s32.totalorder %s18_s13, %s18_s13 }
   0x4   :  { %p272_p0 = scmp.ne.s32.totalorder %s18_s13, %s271_s14  ;;  %p277_p2 = scmp.lt.s32.totalorder %s271_s14, %s271_s14 }
   0x6   :  { %p278_p3 = por %p277_p2, %p276_p1 }
   0x8   :  { %p279_p4 = pnand %p278_p3, %p272_p0 }
   0xa   :  { %282 = shalt.err (!%p279_p4)
}
   0xb   :  { %s308_s15 = smov 256   ;;  %s309_s16 = smov 16  }
   0xc   :  { %23 = dma.hbm_to_vmem [thread:$0]  %s345_s1, 1280, %s18_s13, [#allocation3], %s308_s15, %s308_s15, %s309_s16  }
   0xd   :  { %303 = dma.done.wait [#allocation3], 1280  }
   0xe   :  { %304 = vsyncadd [#allocation3], 4294966016  ;;  %v310_v0 = vmov 0   ;;  %v39_v1 = vld [vmem:[#allocation2 + $0x40] sm:$0x33]  ;;  %vm101_vm0 = vcmask 1041408  }
   0xf   :  { %146 = vmatprep.mubr.bf16.mxu0 %v310_v0  ;;  %187 = vmatprep.mubr.bf16.mxu1 %v310_v0  ;;  %v40_v2 = vld [vmem:[#allocation2 + $0x48] sm:$0x33]  ;;  %v234_v3 = vcombine.high %v39_v1, %v39_v1  ;;  %v233_v5 = vcombine.low %v39_v1, %v39_v1  ;;  %v251_v7 = vld [vmem:[#allocation2 + $0x24] ss:$16 sps:$4 sm:$0xff]   ;;  %v255_v11 = vld [vmem:[#allocation2 + $0x20] ss:$16 sps:$4 sm:$0xff]  }
  0x10   :  { %246 = vset.pattern.permute.xlu0 %v310_v0  ;;  %v236_v4 = vcombine.high %v40_v2, %v40_v2  ;;  %v235_v6 = vcombine.low %v40_v2, %v40_v2  ;;  %v253_v8 = vld [vmem:[#allocation2 + $0x2c] ss:$16 sps:$4 sm:$0xff]   ;;  %v256_v12 = vld [vmem:[#allocation2 + $0x28] ss:$16 sps:$4 sm:$0xff]   ;;  %v257_v13 = vld [vmem:[#allocation2 + $0x4] ss:$16 sps:$4 sm:$0xff]  }
  0x11   :  { %237 = vmatprep.subr.msk.bf16.mxu0 %vm101_vm0, %v234_v3  ;;  %v103_v9 = vsel %vm101_vm0, %v233_v5, 0  ;;  %v259_v14 = vld [vmem:[#allocation2 + $0xc] ss:$16 sps:$4 sm:$0xff]   ;;  %v41_v15 = vld [vmem:[%s346_s2] sm:$0xf]  ;;  %vm97_vm1 = vcmask 293888  }
  0x12   :  { %239 = vmatprep.subr.msk.bf16.mxu1 %vm101_vm0, %v236_v4  ;;  %v109_v10 = vsel %vm101_vm0, %v235_v6, 0  ;;  %125 = vmatpush1.bf16.msra.mxu0 %v103_v9  ;;  %v261_v16 = vld [vmem:[#allocation2] ss:$16 sps:$4 sm:$0xff]   ;;  %v262_v17 = vld [vmem:[#allocation2 + $0x8] ss:$16 sps:$4 sm:$0xff]   ;;  %s311_s2 = smov [#allocation5]  }
  0x13   :  { %166 = vmatpush1.bf16.msra.mxu1 %v109_v10  ;;  %126 = vmatprep.subr.bf16.mxu0 %v251_v7  ;;  %v30_v18 = vld [vmem:[%s344_s0] sm:$0x3]  ;;  %s216_s22 = sshll.u32 %s311_s2, 4  ;;  %s217_s22 = int_to_ptr.vmem [resolvable:$true] %s216_s22 }
  0x14   :  { %167 = vmatprep.subr.bf16.mxu1 %v253_v8  ;;  %44 = vperm.xlu0 %246, %v41_v15   ;;  %s283_s0 = scalar_lea.vmem %s217_s22, 256  ;;  %p288_p6 = scmp.lt.s32.totalorder %s217_s22, %s217_s22 }
  0x15   :  { %p284_p5 = scmp.ne.s32.totalorder %s217_s22, %s283_s0  ;;  %p289_p7 = scmp.lt.s32.totalorder %s283_s0, %s283_s0 }
  0x16   :  { %127 = vmatpush1.bf16.msra.mxu0 %v255_v11 }
  0x17   :  { %168 = vmatpush1.bf16.msra.mxu1 %v256_v12  ;;  %128 = vmatprep.subr.bf16.mxu0 %v257_v13  ;;  %p290_p8 = por %p289_p7, %p288_p6 }
  0x18   :  { %169 = vmatprep.subr.bf16.mxu1 %v259_v14 }
  0x19   :  { %p291_p9 = pnand %p290_p8, %p284_p5 }
  0x1a   :  { %129 = vmatpush1.bf16.msra.mxu0 %v261_v16 }
  0x1b   :  { %170 = vmatpush1.bf16.msra.mxu1 %v262_v17 }
  0x1d   :  { %238 = vmatmul.mubr.msk.bf16.vlgmr.msra.gmra.mxu0 %vm97_vm1, %v30_v18 }
  0x1e   :  { %240 = vmatmul.mubr.msk.bf16.vlgmr.msra.gmra.mxu1 %vm97_vm1, %v30_v18 }
  0x8f   :  { %v45_v19 = vpop.permute.xlu0 %44 }
  0xdd   :  { %v148_v20 = vpop.f32.mrf.mxu0 }
  0xde   :  { %v189_v21 = vpop.f32.mrf.mxu1  ;;  %v149_v22 = vadd.f32 %v148_v20, %v45_v19 }
  0xdf   :  { %v190_v23 = vadd.f32 %v189_v21, %v45_v19  ;;  %v150_v24 = vpop.f32.mrf.mxu0 }
  0xe0   :  { %v191_v25 = vpop.f32.mrf.mxu1  ;;  %v151_v26 = vadd.f32 %v150_v24, %v45_v19  ;;  %v196_v30 = vmax.f32 %v149_v22, 0.0 }
  0xe1   :  { %v192_v27 = vadd.f32 %v191_v25, %v45_v19  ;;  %v152_v28 = vpop.f32.mrf.mxu0  ;;  %v198_v31 = vmax.f32 %v190_v23, 0.0 }
  0xe2   :  { %v193_v29 = vpop.f32.mrf.mxu1  ;;  %v197_v32 = vmax.f32 %v151_v26, 0.0 }
  0xe3   :  { %v199_v33 = vmax.f32 %v192_v27, 0.0  ;;  %v153_v34 = vpop.f32.mrf.mxu0 }
  0xe4   :  { %v194_v35 = vpop.f32.mrf.mxu1  ;;  %v204_v36 = vcombine.low %v196_v30, %v197_v32 }
  0xe5   :  { %v205_v37 = vcombine.low %v198_v31, %v199_v33 }
  0xe6   :  { %208 = vst [vmem:[#allocation5] sm:$0xff] %v204_v36 }
  0xe7   :  { %209 = vst [vmem:[#allocation5 + $0x8] sm:$0xff] %v205_v37 }
  0xe8   :  { %294 = shalt.err (!%p291_p9)
}
  0xe9   :  { %219 = dma.vmem_to_hbm [thread:$0]  %s217_s22, 256, %s347_s3, [#allocation4]  }
  0xea   :  { %305 = dma.done.wait [#allocation4], 256  }
  0xeb   :  { %306 = vsyncadd [#allocation4], 4294967040 }
  0xec   :  { %223 = vsyncpa [#allocation3], 1 }
  0xed   :  { %224 = vsyncpa [#allocation4], 1 }

</bundles_post_ra>
